<compile_context>
chip_gen: v6e
topology: v6e:2x2x1
jax: 0.10.0
libtpu: 0.0.40
codegen_flags: <defaults>
</compile_context>

<pallas_src>
import functools
import math

import jax
import jax.numpy as jnp
from jax.experimental import pallas as pl
from jax.experimental.pallas import tpu as pltpu

_VMEM = pltpu.MemorySpace.VMEM
_LN_EPS = 1e-12


# ----------------------------- shared math ---------------------------------

def _layernorm(x, gamma, beta):
    mu = jnp.mean(x, axis=-1, keepdims=True)
    xc = x - mu
    var = jnp.mean(xc * xc, axis=-1, keepdims=True)
    return xc * jax.lax.rsqrt(var + _LN_EPS) * gamma + beta


def _gelu(x):
    # TODO(synk): HF BERT uses the erf-based GELU; tanh approximation used here
    #   (same formula is used in the in-script reference).
    c = math.sqrt(2.0 / math.pi)
    return 0.5 * x * (1.0 + jnp.tanh(c * (x + 0.044715 * x * x * x)))


# -------------------------- embeddings + LayerNorm --------------------------

def _embed_ln_kernel(wt_ref, pos_ref, g_ref, b_ref, out_ref):
    x = wt_ref[0] + pos_ref[...]                       # (S, H)
    out_ref[0] = _layernorm(x, g_ref[...], b_ref[...]).astype(out_ref.dtype)


def embed_layernorm(word_type_emb, pos_emb, gamma, beta):
    B, S, H = word_type_emb.shape
    return pl.pallas_call(
        _embed_ln_kernel,
        out_shape=jax.ShapeDtypeStruct((B, S, H), word_type_emb.dtype),
        grid=(B,),
        in_specs=[
            pl.BlockSpec((1, S, H), lambda b: (b, 0, 0), memory_space=_VMEM),
            pl.BlockSpec((S, H), lambda b: (0, 0), memory_space=_VMEM),
            pl.BlockSpec((1, H), lambda b: (0, 0), memory_space=_VMEM),
            pl.BlockSpec((1, H), lambda b: (0, 0), memory_space=_VMEM),
        ],
        out_specs=pl.BlockSpec((1, S, H), lambda b: (b, 0, 0),
                               memory_space=_VMEM),
        compiler_params=pltpu.CompilerParams(
            dimension_semantics=("parallel",)),
    )(word_type_emb, pos_emb, gamma.reshape(1, H), beta.reshape(1, H))


# --------------------------- fused encoder layer ----------------------------

def _bert_layer_kernel(x_ref, mask_ref, wqkv_ref, bqkv_ref, wo_ref, bo_ref,
                       g1_ref, be1_ref, wi_ref, bi_ref, wf_ref, bf_ref,
                       g2_ref, be2_ref, out_ref, *, num_heads, head_dim):
    b = pl.program_id(0)
    x = x_ref[0]                                       # (S, H)
    S, H = x.shape
    scale = 1.0 / math.sqrt(head_dim)

    # Fused QKV projection: a single (H, 3H) MXU pass, lane-dense output.
    qkv = jnp.dot(x, wqkv_ref[...],
                  preferred_element_type=jnp.float32) + bqkv_ref[...]
    q = qkv[:, 0 * H:1 * H]
    k = qkv[:, 1 * H:2 * H]
    v = qkv[:, 2 * H:3 * H]

    # Additive key mask for this batch element, (1, S).
    mask_bias = mask_ref[pl.ds(b, 1), :]

    # Multi-head attention (static unroll over heads) + fused output proj.
    wo = wo_ref[...]
    attn = jnp.zeros((S, H), dtype=jnp.float32)
    for h in range(num_heads):
        lo = h * head_dim
        qh = q[:, lo:lo + head_dim] * scale
        kh = k[:, lo:lo + head_dim]
        vh = v[:, lo:lo + head_dim]
        # scores = qh @ kh.T  (contract last dims; same pattern as flash attn)
        s = jax.lax.dot_general(qh, kh, (((1,), (1,)), ((), ())),
                                preferred_element_type=jnp.float32)
        s = s + mask_bias
        s = s - jnp.max(s, axis=-1, keepdims=True)
        p = jnp.exp(s)
        p = p / jnp.sum(p, axis=-1, keepdims=True)
        ctx_h = jnp.dot(p, vh, preferred_element_type=jnp.float32)
        # block-row of the output projection (avoids lane concatenation)
        attn = attn + jnp.dot(ctx_h, wo[lo:lo + head_dim, :],
                              preferred_element_type=jnp.float32)
    attn = attn + bo_ref[...]

    x = _layernorm(x + attn, g1_ref[...], be1_ref[...])

    # Feed-forward: (H, 4H) GELU (4H, H), fully fused.
    hmid = jnp.dot(x, wi_ref[...],
                   preferred_element_type=jnp.float32) + bi_ref[...]
    hmid = _gelu(hmid)
    ffn = jnp.dot(hmid, wf_ref[...],
                  preferred_element_type=jnp.float32) + bf_ref[...]
    x = _layernorm(x + ffn, g2_ref[...], be2_ref[...])

    out_ref[0] = x.astype(out_ref.dtype)


def bert_layer(x, mask_bias, lp, *, num_heads, head_dim):
    B, S, H = x.shape
    F = lp["wi"].shape[1]

    def full(shape):
        return pl.BlockSpec(shape, lambda b: tuple(0 for _ in shape),
                            memory_space=_VMEM)

    kernel = functools.partial(_bert_layer_kernel,
                               num_heads=num_heads, head_dim=head_dim)
    return pl.pallas_call(
        kernel,
        out_shape=jax.ShapeDtypeStruct((B, S, H), x.dtype),
        grid=(B,),
        in_specs=[
            pl.BlockSpec((1, S, H), lambda b: (b, 0, 0), memory_space=_VMEM),
            full((B, S)),
            full((H, 3 * H)), full((1, 3 * H)),
            full((H, H)), full((1, H)),
            full((1, H)), full((1, H)),
            full((H, F)), full((1, F)),
            full((F, H)), full((1, H)),
            full((1, H)), full((1, H)),
        ],
        out_specs=pl.BlockSpec((1, S, H), lambda b: (b, 0, 0),
                               memory_space=_VMEM),
        compiler_params=pltpu.CompilerParams(
            dimension_semantics=("parallel",)),
    )(x, mask_bias,
      lp["wqkv"], lp["bqkv"].reshape(1, 3 * H),
      lp["wo"], lp["bo"].reshape(1, H),
      lp["ln1_g"].reshape(1, H), lp["ln1_b"].reshape(1, H),
      lp["wi"], lp["bi"].reshape(1, F),
      lp["wf"], lp["bf"].reshape(1, H),
      lp["ln2_g"].reshape(1, H), lp["ln2_b"].reshape(1, H))


# --------------------------------- pooler -----------------------------------

def _pooler_kernel(x_ref, w_ref, b_ref, out_ref):
    y = jnp.dot(x_ref[...], w_ref[...],
                preferred_element_type=jnp.float32) + b_ref[...]
    out_ref[...] = jnp.tanh(y).astype(out_ref.dtype)


def bert_pooler(cls_vec, w, b):
    B, H = cls_vec.shape

    def full(shape):
        return pl.BlockSpec(shape, lambda: tuple(0 for _ in shape),
                            memory_space=_VMEM)

    return pl.pallas_call(
        _pooler_kernel,
        out_shape=jax.ShapeDtypeStruct((B, H), cls_vec.dtype),
        grid=(),
        in_specs=[full((B, H)), full((H, H)), full((1, H))],
        out_specs=full((B, H)),
    )(cls_vec, w, b.reshape(1, H))


# ------------------------------ full forward --------------------------------

def bert_forward(params, input_ids, attention_mask, output_hidden_states=True,
                 *, num_heads, head_dim):
    """Mirrors Bert.forward: returns (last_hidden_state, pooler_output,
    hidden_states_tuple)."""
    # Embedding table gathers stay in XLA (a large-vocab gather has no clean
    # small-Pallas equivalent); everything downstream is Pallas.
    token_type_ids = jnp.zeros_like(input_ids)
    wt = params["word_emb"][input_ids] + params["type_emb"][token_type_ids]
    x = embed_layernorm(wt, params["pos_emb"],
                        params["emb_ln_g"], params["emb_ln_b"])

    mask_bias = (1.0 - attention_mask.astype(jnp.float32)) * (-1e9)

    hidden_states = [x]
    for lp in params["layers"]:
        x = bert_layer(x, mask_bias, lp, num_heads=num_heads,
                       head_dim=head_dim)
        hidden_states.append(x)

    pooled = bert_pooler(x[:, 0, :], params["pool_w"], params["pool_b"])
    if output_hidden_states:
        return x, pooled, tuple(hidden_states)
    return x, pooled, None


# ------------------------------- parameters ---------------------------------

def init_params(key, *, vocab, seq, hidden, ffn, layers, types=2, std=0.02):
    def nrm(k, shape):
        return std * jax.random.normal(k, shape, dtype=jnp.float32)

    keys = jax.random.split(key, 6 + layers)
    p = {
        "word_emb": nrm(keys[0], (vocab, hidden)),
        "pos_emb": nrm(keys[1], (seq, hidden)),
        "type_emb": nrm(keys[2], (types, hidden)),
        "emb_ln_g": jnp.ones((hidden,), jnp.float32),
        "emb_ln_b": jnp.zeros((hidden,), jnp.float32),
        "pool_w": nrm(keys[3], (hidden, hidden)),
        "pool_b": jnp.zeros((hidden,), jnp.float32),
        "layers": [],
    }
    for i in range(layers):
        ks = jax.random.split(keys[6 + i], 4)
        p["layers"].append({
            "wqkv": nrm(ks[0], (hidden, 3 * hidden)),
            "bqkv": jnp.zeros((3 * hidden,), jnp.float32),
            "wo": nrm(ks[1], (hidden, hidden)),
            "bo": jnp.zeros((hidden,), jnp.float32),
            "ln1_g": jnp.ones((hidden,), jnp.float32),
            "ln1_b": jnp.zeros((hidden,), jnp.float32),
            "wi": nrm(ks[2], (hidden, ffn)),
            "bi": jnp.zeros((ffn,), jnp.float32),
            "wf": nrm(ks[3], (ffn, hidden)),
            "bf": jnp.zeros((hidden,), jnp.float32),
            "ln2_g": jnp.ones((hidden,), jnp.float32),
            "ln2_b": jnp.zeros((hidden,), jnp.float32),
        })
    return p


# ---------------------------- pure-JAX reference ----------------------------

def _ref_forward(params, input_ids, attention_mask, *, num_heads, head_dim):
    prec = jax.lax.Precision.HIGHEST
    B, S = input_ids.shape
    H = num_heads * head_dim
    token_type_ids = jnp.zeros_like(input_ids)
    x = (params["word_emb"][input_ids] + params["type_emb"][token_type_ids]
         + params["pos_emb"][None])
    x = _layernorm(x, params["emb_ln_g"], params["emb_ln_b"])
    mask_bias = (1.0 - attention_mask.astype(jnp.float32)) * (-1e9)
    hs = [x]
    for lp in params["layers"]:
        qkv = jnp.einsum("bsh,hk->bsk", x, lp["wqkv"], precision=prec) + lp["bqkv"]
        q, k, v = qkv[..., :H], qkv[..., H:2 * H], qkv[..., 2 * H:]
        q = q.reshape(B, S, num_heads, head_dim).transpose(0, 2, 1, 3)
        k = k.reshape(B, S, num_heads, head_dim).transpose(0, 2, 1, 3)
        v = v.reshape(B, S, num_heads, head_dim).transpose(0, 2, 1, 3)
        s = jnp.einsum("bnqd,bnkd->bnqk", q, k, precision=prec) / math.sqrt(head_dim)
        s = s + mask_bias[:, None, None, :]
        pattn = jax.nn.softmax(s, axis=-1)
        ctx = jnp.einsum("bnqk,bnkd->bnqd", pattn, v, precision=prec)
        ctx = ctx.transpose(0, 2, 1, 3).reshape(B, S, H)
        attn = jnp.einsum("bsh,hk->bsk", ctx, lp["wo"], precision=prec) + lp["bo"]
        x = _layernorm(x + attn, lp["ln1_g"], lp["ln1_b"])
        hmid = _gelu(jnp.einsum("bsh,hf->bsf", x, lp["wi"], precision=prec) + lp["bi"])
        ffn = jnp.einsum("bsf,fh->bsh", hmid, lp["wf"], precision=prec) + lp["bf"]
        x = _layernorm(x + ffn, lp["ln2_g"], lp["ln2_b"])
        hs.append(x)
    pooled = jnp.tanh(jnp.einsum("bh,hk->bk", x[:, 0, :], params["pool_w"],
                                 precision=prec) + params["pool_b"])
    return x, pooled, tuple(hs)


# ----------------------------------- main ------------------------------------

if __name__ == "__main__":
    B, S = 2, 16
    NUM_HEADS, HEAD_DIM = 2, 64
    H = NUM_HEADS * HEAD_DIM        # 128 -> lane-dense outputs everywhere
    FFN = 4 * H                     # 512
    LAYERS = 2
    VOCAB = 512

    key = jax.random.PRNGKey(0)
    k_params, k_ids = jax.random.split(key)
    params = init_params(k_params, vocab=VOCAB, seq=S, hidden=H, ffn=FFN,
                         layers=LAYERS)

    input_ids = jax.random.randint(k_ids, (B, S), 0, VOCAB, dtype=jnp.int32)
    attention_mask = jnp.ones((B, S), dtype=jnp.float32).at[1, 12:].set(0.0)

    last_hidden, pooled, hidden_states = bert_forward(
        params, input_ids, attention_mask, output_hidden_states=True,
        num_heads=NUM_HEADS, head_dim=HEAD_DIM)
    jax.block_until_ready((last_hidden, pooled, hidden_states))

    ref_last, ref_pooled, ref_hs = _ref_forward(
        params, input_ids, attention_mask,
        num_heads=NUM_HEADS, head_dim=HEAD_DIM)

    assert last_hidden.shape == (B, S, H) and pooled.shape == (B, H)
    assert len(hidden_states) == LAYERS + 1
    assert jnp.allclose(last_hidden, ref_last, atol=5e-3, rtol=5e-3)
    assert jnp.allclose(pooled, ref_pooled, atol=5e-3, rtol=5e-3)
    for got, want in zip(hidden_states, ref_hs):
        assert jnp.allclose(got, want, atol=5e-3, rtol=5e-3)

    print("KERNEL_OK")
</pallas_src>

<mosaic_0001>
module attributes {stable_mosaic.version = 11 : i64} {
  func.func @_embed_ln_kernel(%arg0: i32, %arg1: memref<1x16x128xf32, #tpu.memory_space<vmem>>, %arg2: memref<16x128xf32, #tpu.memory_space<vmem>>, %arg3: memref<1x128xf32, #tpu.memory_space<vmem>>, %arg4: memref<1x128xf32, #tpu.memory_space<vmem>>, %arg5: memref<1x16x128xf32, #tpu.memory_space<vmem>>) attributes {dimension_semantics = [#tpu.dimension_semantics<parallel>], iteration_bounds = array<i64: 2>, scalar_prefetch = 0 : i64, scratch_operands = 0 : i64, tpu.core_type = #tpu.core_type<tc>, window_params = [{transform_indices = @transform_0, window_bounds = array<i64: 1, 16, 128>}, {pipeline_mode = #tpu.pipeline_mode<synchronous>, transform_indices = @transform_1, window_bounds = array<i64: 16, 128>}, {pipeline_mode = #tpu.pipeline_mode<synchronous>, transform_indices = @transform_2, window_bounds = array<i64: 1, 128>}, {pipeline_mode = #tpu.pipeline_mode<synchronous>, transform_indices = @transform_3, window_bounds = array<i64: 1, 128>}, {transform_indices = @transform_4, window_bounds = array<i64: 1, 16, 128>}]} {
    %c0 = arith.constant 0 : index
    %c0_0 = arith.constant 0 : index
    %c0_1 = arith.constant 0 : index
    %0 = vector.load %arg1[%c0, %c0_0, %c0_1] : memref<1x16x128xf32, #tpu.memory_space<vmem>>, vector<1x16x128xf32>
    %1 = vector.shape_cast %0 : vector<1x16x128xf32> to vector<16x128xf32>
    %c0_2 = arith.constant 0 : index
    %c0_3 = arith.constant 0 : index
    %2 = vector.load %arg2[%c0_2, %c0_3] : memref<16x128xf32, #tpu.memory_space<vmem>>, vector<16x128xf32>
    %3 = arith.addf %1, %2 : vector<16x128xf32>
    %c0_4 = arith.constant 0 : index
    %c0_5 = arith.constant 0 : index
    %4 = vector.load %arg3[%c0_4, %c0_5] : memref<1x128xf32, #tpu.memory_space<vmem>>, vector<1x128xf32>
    %c0_6 = arith.constant 0 : index
    %c0_7 = arith.constant 0 : index
    %5 = vector.load %arg4[%c0_6, %c0_7] : memref<1x128xf32, #tpu.memory_space<vmem>>, vector<1x128xf32>
    %cst = arith.constant dense<0.000000e+00> : vector<16xf32>
    %6 = vector.multi_reduction <add>, %3, %cst [1] : vector<16x128xf32> to vector<16xf32>
    %7 = vector.shape_cast %6 : vector<16xf32> to vector<16x1xf32>
    %cst_8 = arith.constant 1.280000e+02 : f32
    %8 = vector.broadcast %cst_8 : f32 to vector<16x1xf32>
    %9 = arith.divf %7, %8 : vector<16x1xf32>
    %10 = vector.broadcast %9 : vector<16x1xf32> to vector<16x128xf32>
    %11 = arith.subf %3, %10 : vector<16x128xf32>
    %12 = arith.mulf %11, %11 : vector<16x128xf32>
    %cst_9 = arith.constant dense<0.000000e+00> : vector<16xf32>
    %13 = vector.multi_reduction <add>, %12, %cst_9 [1] : vector<16x128xf32> to vector<16xf32>
    %14 = vector.shape_cast %13 : vector<16xf32> to vector<16x1xf32>
    %cst_10 = arith.constant 1.280000e+02 : f32
    %15 = vector.broadcast %cst_10 : f32 to vector<16x1xf32>
    %16 = arith.divf %14, %15 : vector<16x1xf32>
    %cst_11 = arith.constant 9.99999996E-13 : f32
    %17 = vector.broadcast %cst_11 : f32 to vector<16x1xf32>
    %18 = arith.addf %16, %17 : vector<16x1xf32>
    %19 = math.rsqrt %18 : vector<16x1xf32>
    %20 = vector.broadcast %19 : vector<16x1xf32> to vector<16x128xf32>
    %21 = arith.mulf %11, %20 : vector<16x128xf32>
    %22 = vector.broadcast %4 : vector<1x128xf32> to vector<16x128xf32>
    %23 = arith.mulf %21, %22 : vector<16x128xf32>
    %24 = vector.broadcast %5 : vector<1x128xf32> to vector<16x128xf32>
    %25 = arith.addf %23, %24 : vector<16x128xf32>
    %c0_12 = arith.constant 0 : index
    %c0_13 = arith.constant 0 : index
    %c0_14 = arith.constant 0 : index
    %26 = vector.load %arg5[%c0_12, %c0_13, %c0_14] : memref<1x16x128xf32, #tpu.memory_space<vmem>>, vector<1x16x128xf32>
    %27 = vector.shape_cast %26 : vector<1x16x128xf32> to vector<16x128xf32>
    %28 = vector.shape_cast %25 : vector<16x128xf32> to vector<1x16x128xf32>
    tpu.vector_store %arg5[%c0_12, %c0_13, %c0_14], %28 {strides = array<i32>} : memref<1x16x128xf32, #tpu.memory_space<vmem>>, vector<1x16x128xf32>,
    return
  }
  func.func @transform_0(%arg0: i32) -> (i32, i32, i32) {
    %c0_i32 = arith.constant 0 : i32
    %c0_i32_0 = arith.constant 0 : i32
    %c0_i32_1 = arith.constant 0 : i32
    return %arg0, %c0_i32, %c0_i32_0 : i32, i32, i32
  }
  func.func @transform_1(%arg0: i32) -> (i32, i32) {
    %c0_i32 = arith.constant 0 : i32
    %c0_i32_0 = arith.constant 0 : i32
    %c0_i32_1 = arith.constant 0 : i32
    return %c0_i32, %c0_i32_0 : i32, i32
  }
  func.func @transform_2(%arg0: i32) -> (i32, i32) {
    %c0_i32 = arith.constant 0 : i32
    %c0_i32_0 = arith.constant 0 : i32
    %c0_i32_1 = arith.constant 0 : i32
    return %c0_i32, %c0_i32_0 : i32, i32
  }
  func.func @transform_3(%arg0: i32) -> (i32, i32) {
    %c0_i32 = arith.constant 0 : i32
    %c0_i32_0 = arith.constant 0 : i32
    %c0_i32_1 = arith.constant 0 : i32
    return %c0_i32, %c0_i32_0 : i32, i32
  }
  func.func @transform_4(%arg0: i32) -> (i32, i32, i32) {
    %c0_i32 = arith.constant 0 : i32
    %c0_i32_0 = arith.constant 0 : i32
    %c0_i32_1 = arith.constant 0 : i32
    return %arg0, %c0_i32, %c0_i32_0 : i32, i32, i32
  }
}

</mosaic_0001>

<bundles_post_ra>
// kernel: tpu_custom_call.1
= control target key start
LH: loop header
LB: loop body
LE: loop exit
PB: predicated region body
PF: predicated region fallthrough
CT: control target
= control target key end

     0   :  { %9 = vsyncpa [#allocation3], 0  ;;  %s811_s0 = inlined_call_operand.hbm [shape: f32[2,16,128], index: 0, kind: input, shape index: {}]   ;;  %s812_s1 = inlined_call_operand.hbm [shape: f32[16,128], index: 1, kind: input, shape index: {}]   ;;  %s813_s2 = inlined_call_operand.vmem [shape: f32[1,128], index: 2, kind: input, shape index: {}]   ;;  %s814_s3 = inlined_call_operand.vmem [shape: f32[1,128], index: 3, kind: input, shape index: {}]   ;;  %s815_s4 = inlined_call_operand.hbm [shape: f32[2,16,128], index: 4, kind: output, shape index: {}]  }
   0x1   :  { %11 = vsyncpa [#allocation3 + $0x1], 0 }
   0x2   :  { %12 = vsyncpa [#allocation6], 0 }
   0x3   :  { %13 = vsyncpa [#allocation4], 0 }
   0x4   :  { %15 = vsyncpa [#allocation4 + $0x1], 0  ;;  %s618_s15 = smov 0   ;;  %s620_s16 = smov 0  }
   0x5   :  { %s622_s17 = smov 0   ;;  %s624_s18 = smov 0  }
   0x6 LB: > { %s639_s19 = sadd.s32 4294967295, %s584_s18   ;;  %s377_s20 = sadd.s32 4294967294, %s584_s18   ;;  %s584_s18 = sphi %s624_s18, %s837_s18   ;;  %s580_s17 = sphi %s622_s17, %s836_s17   ;;  %s576_s16 = sphi %s620_s16, %s835_s16   ;;  %s572_s15 = sphi %s618_s15, %s834_s15  }
   0x7   : > { %p41_p0 = scmp.ne.s32.totalorder %s576_s16, %s572_s15  ;;  %p816_p1 = scmp.eq.s32.totalorder %s639_s19, 0 }
   0x8   : > { %p134_p3 = scmp.eq.s32.totalorder %s377_s20, 1  ;;  %p378_p5 = scmp.ge.s32.totalorder %s584_s18, 1 }
   0x9   : > { %p648_p4 = por %p816_p1, %p41_p0  ;;  %p141_p7 = scmp.lt.s32.totalorder %s584_s18, 3 }
   0xa   : > { %p653_p6 = por %p134_p3, %p41_p0  ;;  %s586_s24 = smov [#allocation5]  }
   0xb   : > { %s820_s21 = scalar_select %p648_p4, 1, 0 }
   0xc   : > { %s821_s22 = scalar_select %p653_p6, 1, 0 }
   0xd   : > { %p658_p8 = pnand %p378_p5, %p141_p7  ;;  %s153_s25 = sshll.u32 %s586_s24, 4  ;;  %s154_s25 = int_to_ptr.vmem [resolvable:$true] %s153_s25 }
   0xe   : > { %s672_s27 = sadd.s32 1, %s584_s18   ;;  %s28_s28 = sadd.s32 1, %s580_s17 }
   0xf   : > { %s822_s23 = scalar_select %p658_p8, 1, 0 }
  0x10   : > { %p405_p9 = pneg %p658_p8  ;;  %s25_s29 = ssub.s32 %s584_s18, %s672_s27 }
  0x11   : > { %s473_s30 = scalar_lea.vmem %s154_s25, 256  ;;  %p481_p5 = scmp.lt.s32.totalorder %s154_s25, %s154_s25 }
  0x12   : > { %p667_p11 = pnand %p405_p9, %p816_p1  ;;  %p474_p13 = scmp.ne.s32.totalorder %s154_s25, %s473_s30 }
  0x13   : > { %p482_p7 = scmp.lt.s32.totalorder %s473_s30, %s473_s30 }
  0x14   : > { %p464_p12 = pneg %p667_p11 }
  0x15   : > { %p483_p10 = por %p482_p7, %p481_p5 }
  0x16   : > { %p476_p0 = pnand %p474_p13, %p464_p12 }
  0x18   : > { %p477_p3 = pneg %p476_p0 }
  0x1a   : > { %p484_p2 = pnand %p483_p10, %p477_p3 }
  0x1c   : > { %487 = shalt.err (!%p484_p2)
}
  0x1d   : > { %s587_s5 = smov 128   ;;  %s588_s6 = smov 8  }
  0x1e   : > { %408 = dma.hbm_to_vmem [thread:$0]  (!%p667_p11), %s812_s1, 256, %s154_s25, [#allocation6], %s587_s5, %s587_s5, %s588_s6  }
  0x1f   : > { %p26_p2 = scmp.eq.s32.totalorder %s25_s29, 0  ;;  %p35_p9 = scmp.ne.s32.totalorder %s580_s17, %s576_s16 }
  0x20   : > { %p36_p10 = scmp.eq.s32.totalorder %s584_s18, 0  ;;  %p418_p12 = scmp.lt.s32.totalorder %s584_s18, 2 }
  0x21   : > { %s692_s9 = scalar_select %p26_p2, %s580_s17, %s28_s28  }
  0x22   : > { %p37_p13 = por %p36_p10, %p35_p9  ;;  %p824_p0 = scmp.eq.s32.totalorder %s639_s19, 1 }
  0x23   : > { %s173_s11 = sand.u32 1, %s580_s17   ;;  %s395_s12 = sshll.u32 %s584_s18, 8 }
  0x24   : > { %p696_p3 = por %p824_p0, %p35_p9  ;;  %s381_s13 = sshll.u32 %s173_s11, 4 }
  0x25   : > { %s705_s24 = scalar_lea.hbm %s811_s0, %s395_s12  ;;  %s177_s25 = scalar_lea.vmem [#allocation2], %s381_s13 }
  0x26   : > { %s825_s10 = scalar_select %p696_p3, 1, 0 }
  0x27   : > { %s184_s26 = sshll.u32 %s177_s25, 4  ;;  %p707_p11 = pnand %p418_p12, %p37_p13  ;;  %s711_s26 = int_to_ptr.vmem [resolvable:$true] %s184_s26 }
  0x28   : > { %s713_s29 = scalar_lea.sflag [#allocation3], %s173_s11  ;;  %s488_s30 = scalar_lea.hbm %s705_s24, 256 }
  0x29   : > { %p489_p5 = scmp.ne.s32.totalorder %s705_s24, %s488_s30  ;;  %p490_p7 = pneg %p707_p11 }
  0x2a   : > { %s493_s12 = scalar_lea.hbm %s811_s0, 512  ;;  %p494_p10 = scmp.lt.s32.totalorder %s705_s24, %s811_s0 }
  0x2b   : > { %p491_p2 = pnand %p490_p7, %p489_p5  ;;  %p495_p12 = scmp.lt.s32.totalorder %s493_s12, %s488_s30 }
  0x2d   : > { %p492_p9 = pneg %p491_p2  ;;  %p496_p13 = por %p495_p12, %p494_p10 }
  0x2f   : > { %p497_p0 = pnand %p496_p13, %p492_p9 }
  0x31   : > { %500 = shalt.err (!%p497_p0)
}
  0x32   : > { %s501_s11 = scalar_lea.vmem %s711_s26, 256  ;;  %s589_s20 = smov [#allocation2]  }
  0x33   : > { %p502_p1 = scmp.ne.s32.totalorder %s711_s26, %s501_s11  ;;  %s506_s25 = sshll.u32 %s589_s20, 4  ;;  %s507_s25 = int_to_ptr.vmem [resolvable:$false] %s506_s25 }
  0x34   : > { %s508_s7 = scalar_lea.vmem %s507_s25, 512  ;;  %p509_p2 = scmp.lt.s32.totalorder %s711_s26, %s507_s25 }
  0x35   : > { %p504_p6 = pnand %p502_p1, %p490_p7  ;;  %p510_p3 = scmp.lt.s32.totalorder %s508_s7, %s501_s11 }
  0x37   : > { %p505_p5 = pneg %p504_p6  ;;  %p511_p4 = por %p510_p3, %p509_p2 }
  0x39   : > { %p512_p8 = pnand %p511_p4, %p505_p5 }
  0x3b   : > { %515 = shalt.err (!%p512_p8)
}
  0x3c   : > { %412 = dma.hbm_to_vmem [thread:$0]  (!%p707_p11), %s705_s24, 256, %s711_s26, %s713_s29, %s587_s5, %s587_s5, %s588_s6  }
  0x3d   : > { %p827_p1 = scmp.ne.s32.totalorder %s822_s23, 0 }
  0x3e   : > { %s740_s30 = sand.u32 (!%p827_p1), 1, %s576_s16   ;;  %p828_p4 = scmp.ne.s32.totalorder (!%p827_p1), %s820_s21, 0 }
  0x3f   : > { %196 = sbr.rel (%p827_p1) target bundleno = 400 (0x190), region = 36  ;;  %s385_s8 = sshll.u32 (!%p827_p1), %s740_s30, 4 }
  0x40   : > { %s199_s12 = scalar_lea.sflag (!%p827_p1), [#allocation3], %s740_s30  ;;  %s202_s28 = scalar_lea.vmem (!%p827_p1), [#allocation2], %s385_s8 }
  0x44   : > { %559 = dma.done.wait (%p828_p4), %s199_s12, 256  }
  0x45   : > { %561 = vsyncadd (%p828_p4), %s199_s12, 4294967040  ;;  %p829_p6 = scmp.eq.s32.totalorder %s639_s19, 0 }
  0x47   : > { %563 = dma.done.wait (%p829_p6), [#allocation6], 256   ;;  %p830_p8 = pmov %p829_p6 }
  0x48   : > { %v231_v0 = vld [vmem:[%s202_s28] sm:$0xff]  ;;  %v232_v2 = vld [vmem:[%s202_s28 + $0x8] sm:$0xff]  ;;  %s396_s24 = sshll.u32 %s639_s19, 8  ;;  %s230_s26 = scalar_lea.vmem [#allocation7], %s385_s8 }
  0x49   : > { %565 = vsyncadd (%p830_p8), [#allocation6], 4294967040  ;;  %v233_v1 = vld [vmem:[#allocation5] sm:$0xff]  ;;  %v234_v4 = vld [vmem:[#allocation5 + $0x8] sm:$0xff]  ;;  %s294_s29 = sshll.u32 %s230_s26, 4  ;;  %s766_s11 = scalar_lea.hbm %s815_s4, %s396_s24  ;;  %s768_s29 = int_to_ptr.vmem [resolvable:$true] %s294_s29 }
  0x4a   : > { %v235_v3 = vadd.f32 %v233_v1, %v231_v0  ;;  %v236_v5 = vadd.f32 %v234_v4, %v232_v2  ;;  %v388_v21 = vld [vmem:[%s813_s2] ss:$0 sm:$0xff]  ;;  %s281_s20 = scalar_lea.sflag [#allocation4], %s740_s30  ;;  %s516_s25 = scalar_lea.vmem %s768_s29, 256 }
  0x4b   : > { %v389_v23 = vld [vmem:[%s814_s3] ss:$0 sm:$0xff]  ;;  %p517_p3 = scmp.ne.s32.totalorder %s768_s29, %s516_s25  ;;  %p831_p11 = scmp.ne.s32.totalorder %s825_s10, 0 }
  0x4c   : > { %239 = vadd.xlane.f32.xlu0 %v235_v3  ;;  %s590_s19 = smov [#allocation7]  }
  0x4d   : > { %p518_p7 = pnand %p517_p3, %p831_p11  ;;  %s520_s7 = sshll.u32 %s590_s19, 4  ;;  %s521_s7 = int_to_ptr.vmem [resolvable:$false] %s520_s7 }
  0x4e   : > { %s522_s8 = scalar_lea.vmem %s521_s7, 512  ;;  %p523_p10 = scmp.lt.s32.totalorder %s768_s29, %s521_s7 }
  0x4f   : > { %p519_p9 = pneg %p518_p7  ;;  %p524_p12 = scmp.lt.s32.totalorder %s522_s8, %s516_s25 }
  0x50   : > { %241 = vadd.xlane.f32.xlu0 %v236_v5 }
  0x51   : > { %p525_p13 = por %p524_p12, %p523_p10 }
  0x53   : > { %p526_p0 = pnand %p525_p13, %p519_p9 }
  0xd5   : > { %v240_v6 = vpop.xlane.xlu0 %239 }
  0xd6   : > { %v244_v7 = vmul.f32 0.0078125, %v240_v6 }
  0xd8   : > { %v246_v8 = vsub.f32 %v235_v3, %v244_v7 }
  0xd9   : > { %v242_v9 = vpop.xlane.xlu0 %241 }
  0xda   : > { %v245_v10 = vmul.f32 0.0078125, %v242_v9  ;;  %v248_v11 = vmul.f32 %v246_v8, %v246_v8 }
  0xdc   : > { %v247_v12 = vsub.f32 %v236_v5, %v245_v10  ;;  %250 = vadd.xlane.f32.xlu1 %v248_v11 }
  0xde   : > { %v249_v13 = vmul.f32 %v247_v12, %v247_v12 }
  0xe0   : > { %252 = vadd.xlane.f32.xlu1 %v249_v13 }
 0x165   : > { %v251_v14 = vpop.xlane.xlu1 %250 }
 0x166   : > { %v254_v15 = vmul.f32 0.0078125, %v251_v14 }
 0x168   : > { %v256_v16 = vadd.f32 1e-12, %v254_v15 }
 0x169   : > { %v253_v17 = vpop.xlane.xlu1 %252 }
 0x16a   : > { %458 = vrsqrt.f32 %v256_v16  ;;  %v255_v18 = vmul.f32 0.0078125, %v253_v17 }
 0x16c   : > { %v257_v19 = vadd.f32 1e-12, %v255_v18 }
 0x16e   : > { %460 = vrsqrt.f32 %v257_v19 }
 0x177   : > { %v459_v20 = vpop.eup %458 }
 0x178   : > { %v260_v22 = vmul.f32 %v459_v20, %v246_v8 }
 0x17a   : > { %v268_v24 = vmul.f32 %v388_v21, %v260_v22 }
 0x17b   : > { %v461_v25 = vpop.eup %460 }
 0x17c   : > { %v276_v26 = vadd.f32 %v389_v23, %v268_v24  ;;  %v261_v27 = vmul.f32 %v461_v25, %v247_v12 }
 0x17e   : > { %v269_v28 = vmul.f32 %v388_v21, %v261_v27  ;;  %278 = vst [vmem:[%s230_s26] sm:$0xff] %v276_v26 }
 0x180   : > { %v277_v29 = vadd.f32 %v389_v23, %v269_v28 }
 0x182   : > { %279 = vst [vmem:[%s230_s26 + $0x8] sm:$0xff] %v277_v29 }
 0x183   : > { %529 = shalt.err (!%p526_p0)
}
 0x184   : > { %s530_s12 = scalar_lea.hbm %s766_s11, 256  ;;  %s534_s23 = scalar_lea.hbm %s815_s4, 512 }
 0x185   : > { %p531_p5 = scmp.ne.s32.totalorder %s766_s11, %s530_s12  ;;  %p535_p4 = scmp.lt.s32.totalorder %s766_s11, %s815_s4 }
 0x186   : > { %p536_p6 = scmp.lt.s32.totalorder %s534_s23, %s530_s12 }
 0x187   : > { %p532_p2 = pnand %p531_p5, %p831_p11 }
 0x188   : > { %p537_p8 = por %p536_p6, %p535_p4 }
 0x189   : > { %p533_p1 = pneg %p532_p2 }
 0x18b   : > { %p538_p3 = pnand %p537_p8, %p533_p1 }
 0x18d   : > { %541 = shalt.err (!%p538_p3)
}
 0x18e   : > { %s591_s24 = smov 128   ;;  %s592_s26 = smov 8  }
 0x18f   : > { %403 = dma.vmem_to_hbm [thread:$0]  (%p831_p11), %s768_s29, 256, %s766_s11, %s281_s20, %s591_s24, %s591_s24, %s592_s26  }
 0x190 PF: > { %s309_s13 = sand.u32 1, %s572_s15   ;;  %p832_p7 = scmp.ne.s32.totalorder %s821_s22, 0 }
 0x191   : > { %p833_p9 = scmp.ge.s32.totalorder %s584_s18, 2  ;;  %s310_s14 = scalar_lea.sflag [#allocation4], %s309_s13 }
 0x193   : > { %p414_p10 = pnand %p833_p9, %p832_p7 }
 0x195   : > { %p415_p12 = pneg %p414_p10 }
 0x197   : > { %567 = dma.done.wait (%p415_p12), %s310_s14, 256  }
 0x198   : > { %569 = vsyncadd (%p415_p12), %s310_s14, 4294967040  ;;  %p18_p13 = scmp.ge.s32.totalorder %s672_s27, 4   ;;  %s834_s15 = smov %s576_s16 }
 0x199   : > { %s835_s16 = smov %s580_s17  ;;  %s836_s17 = smov %s692_s9 }
 0x19a   : > { %s837_s18 = smov %s672_s27  ;;  %20 = sbr.rel (!%p18_p13) target bundleno = 6 (0x6), region = 85 }
 0x19f   :  { %315 = vsyncpa [#allocation3], 1 }
 0x1a0   :  { %317 = vsyncpa [#allocation3 + $0x1], 1 }
 0x1a1   :  { %318 = vsyncpa [#allocation6], 1 }
 0x1a2   :  { %319 = vsyncpa [#allocation4], 1 }
 0x1a3   :  { %321 = vsyncpa [#allocation4 + $0x1], 1 }

</bundles_post_ra>
